<compile_context>
chip_gen: v7x
topology: tpu7x:2x2x1
jax: 0.10.0
libtpu: 0.0.40
codegen_flags: <defaults>
</compile_context>

<pallas_src>
import jax
import jax.numpy as jnp
from jax.experimental import pallas as pl
from jax.experimental.pallas import tpu as pltpu

# ---- small, TPU-friendly synthetic sizes (stand-ins for 768 / 256 / etc.) ----
BATCH = 2
SEQ = 8
HIDDEN = 128
MAXLEN = 16
VOCAB = 64
NUM_PREDICATES = 4
OBJ_DIM = NUM_PREDICATES * 2
PAD = 128            # lane-dense output / weight-slab width


def re_model_head(out, sub_ids, params):
    """Fused Pallas RE head.  out: (B,S,H) f32, sub_ids: (B,2) i32."""
    B, S, H = out.shape
    maxlen = params["sub_pos_emb"].shape[0]
    two_p = params["w_obj"].shape[1]
    assert H == PAD, "synthetic head assumes hidden == 128 for lane-dense packing"

    # ---- wrapper-side parameter prep (pure layout plumbing) ----
    # Fold BertLayerNorm affine into the next linear (mathematically exact):
    #   relu((ln_w*xn + ln_b) @ W + b) == relu(xn @ (ln_w[:,None]*W) + (ln_b@W + b))
    w_lin_f = params["ln_w"].reshape(H, 1) * params["w_lin"]         # (H, H)
    b_lin_f = params["ln_b"] @ params["w_lin"] + params["b_lin"]     # (1, H)

    # Pad 2- and 2P-wide heads to 128 lanes so output stores are lane-dense.
    w_sub_p = jnp.zeros((H, PAD), jnp.float32).at[:, :2].set(params["w_sub"])
    w_obj_p = jnp.zeros((H, PAD), jnp.float32).at[:, :two_p].set(params["w_obj"])
    w_slab = jnp.stack([w_sub_p, w_lin_f, w_obj_p], axis=0)          # (3, H, 128)

    b_slab = jnp.zeros((8, PAD), jnp.float32)
    b_slab = b_slab.at[0, :2].set(params["b_sub"][0])
    b_slab = b_slab.at[1, :H].set(b_lin_f[0])
    b_slab = b_slab.at[2, :two_p].set(params["b_obj"][0])

    out_flat = out.reshape(B * S, H)                                 # (16, 128)

    def re_head_kernel(sub_ids_ref,   # SMEM (B, 2) int32 (scalar prefetch)
                       out_ref,       # VMEM (B*S, H)
                       pos_ref,       # VMEM (MAXLEN, H)
                       w_ref,         # VMEM (3, H, PAD)  [Wsub_pad, Wlin_fused, Wobj_pad]
                       b_ref,         # VMEM (8, PAD)     rows 0/1/2 = biases
                       lsub_ref,      # out  (B*S, PAD)
                       lobj_ref):     # out  (B*S, PAD)
        x = out_ref[...]                                             # (B*S, H)

        # logits_sub = out @ Wsub + bsub   (padded to 128 lanes)
        lsub_ref[...] = (jnp.dot(x, w_ref[0],
                                 preferred_element_type=jnp.float32)
                         + b_ref[0:1, :])

        # subject start/end: position embeddings + gathered hidden rows.
        # Sum the four (1,H) rows first, then one broadcast add per batch.
        # NOTE: VMEM refs have no runtime bounds check -- sub_ids must be
        # < min(S, MAXLEN) on real data.
        x1_parts = []
        for b in range(B):
            s_idx = sub_ids_ref[b, 0]
            e_idx = sub_ids_ref[b, 1]
            combined = (pos_ref[pl.ds(s_idx, 1), :]
                        + pos_ref[pl.ds(e_idx, 1), :]
                        + out_ref[pl.ds(b * S + s_idx, 1), :]
                        + out_ref[pl.ds(b * S + e_idx, 1), :])       # (1, H)
            x1_parts.append(x[b * S:(b + 1) * S, :] + combined)      # (S, H)
        x1 = jnp.concatenate(x1_parts, axis=0)                       # (B*S, H)

        # BertLayerNorm, eps=1e-12 (affine folded into w_ref[1] / b_ref[1]).
        mean = jnp.mean(x1, axis=-1, keepdims=True)
        var = jnp.mean((x1 - mean) ** 2, axis=-1, keepdims=True)
        xn = (x1 - mean) * jax.lax.rsqrt(var + 1e-12)

        # dropout(p=0.5) -> identity in eval mode
        h = jnp.maximum(jnp.dot(xn, w_ref[1],
                                preferred_element_type=jnp.float32)
                        + b_ref[1:2, :], 0.0)                        # ReLU
        # dropout(p=0.4) -> identity in eval mode
        lobj_ref[...] = (jnp.dot(h, w_ref[2],
                                 preferred_element_type=jnp.float32)
                         + b_ref[2:3, :])

    grid_spec = pltpu.PrefetchScalarGridSpec(
        num_scalar_prefetch=1,
        grid=(1,),                      # single step: whole (B*S, H) slab at once
        in_specs=[
            pl.BlockSpec((B * S, H), lambda i, sub: (0, 0)),
            pl.BlockSpec((maxlen, H), lambda i, sub: (0, 0)),
            pl.BlockSpec((3, H, PAD), lambda i, sub: (0, 0, 0)),
            pl.BlockSpec((8, PAD), lambda i, sub: (0, 0)),
        ],
        out_specs=[
            pl.BlockSpec((B * S, PAD), lambda i, sub: (0, 0)),
            pl.BlockSpec((B * S, PAD), lambda i, sub: (0, 0)),
        ],
    )

    lsub_p, lobj_p = pl.pallas_call(
        re_head_kernel,
        out_shape=(
            jax.ShapeDtypeStruct((B * S, PAD), jnp.float32),
            jax.ShapeDtypeStruct((B * S, PAD), jnp.float32),
        ),
        grid_spec=grid_spec,
        compiler_params=pltpu.CompilerParams(dimension_semantics=("arbitrary",)),
    )(sub_ids, out_flat, params["sub_pos_emb"], w_slab, b_slab)

    logits_sub = lsub_p[:, :2].reshape(B, S, 2)
    obj_preds = lobj_p[:, :two_p].reshape(B, S, two_p // 2, 2)
    return logits_sub, obj_preds


def init_params(key):
    ks = jax.random.split(key, 10)
    scale = 0.02
    return {
        # TODO(synk): full pretrained BertModel encoder has no clean Pallas
        # equivalent here; a deterministic token+segment embedding stand-in
        # produces the (B, S, H) hidden states fed to the head kernel.
        "tok_emb": scale * jax.random.normal(ks[0], (VOCAB, HIDDEN), jnp.float32),
        "seg_emb": scale * jax.random.normal(ks[1], (2, HIDDEN), jnp.float32),
        "sub_pos_emb": scale * jax.random.normal(ks[2], (MAXLEN, HIDDEN), jnp.float32),
        "w_sub": scale * jax.random.normal(ks[3], (HIDDEN, 2), jnp.float32),
        "b_sub": jnp.zeros((1, 2), jnp.float32),
        # non-trivial LN affine so the wrapper-side fold is actually exercised
        "ln_w": 1.0 + 0.1 * jax.random.normal(ks[4], (1, HIDDEN), jnp.float32),
        "ln_b": 0.02 * jax.random.normal(ks[5], (1, HIDDEN), jnp.float32),
        "w_lin": scale * jax.random.normal(ks[6], (HIDDEN, HIDDEN), jnp.float32),
        "b_lin": scale * jax.random.normal(ks[7], (1, HIDDEN), jnp.float32),
        "w_obj": scale * jax.random.normal(ks[8], (HIDDEN, OBJ_DIM), jnp.float32),
        "b_obj": scale * jax.random.normal(ks[9], (1, OBJ_DIM), jnp.float32),
    }


def bert_standin(token_ids, seg_ids, params):
    # Deterministic encoder stand-in (plain-JAX glue).
    return params["tok_emb"][token_ids] + params["seg_emb"][seg_ids]


def reference_head(out, sub_ids, params):
    """Pure-JAX reference of the post-BERT forward (unfused params)."""
    B = out.shape[0]
    logits_sub = out @ params["w_sub"] + params["b_sub"]
    s, e = sub_ids[:, 0], sub_ids[:, 1]
    start_emb = params["sub_pos_emb"][s][:, None, :]
    end_emb = params["sub_pos_emb"][e][:, None, :]
    start_out = out[jnp.arange(B), s][:, None, :]
    end_out = out[jnp.arange(B), e][:, None, :]
    x1 = out + start_emb + start_out + end_emb + end_out
    mean = x1.mean(-1, keepdims=True)
    var = ((x1 - mean) ** 2).mean(-1, keepdims=True)
    x1 = params["ln_w"] * ((x1 - mean) / jnp.sqrt(var + 1e-12)) + params["ln_b"]
    h = jnp.maximum(x1 @ params["w_lin"] + params["b_lin"], 0.0)
    logits_obj = h @ params["w_obj"] + params["b_obj"]
    return logits_sub, logits_obj.reshape(B, out.shape[1], NUM_PREDICATES, 2)


if __name__ == "__main__":
    key = jax.random.PRNGKey(0)
    pkey, tkey, skey, ikey = jax.random.split(key, 4)
    params = init_params(pkey)

    token_ids = jax.random.randint(tkey, (BATCH, SEQ), 0, VOCAB, dtype=jnp.int32)
    seg_ids = jax.random.randint(skey, (BATCH, SEQ), 0, 2, dtype=jnp.int32)
    sub_ids = jax.random.randint(ikey, (BATCH, 2), 0, SEQ, dtype=jnp.int32)

    out = bert_standin(token_ids, seg_ids, params)          # (B, S, H) f32

    head_fn = jax.jit(re_model_head)
    logits_sub, obj_preds = head_fn(out, sub_ids, params)
    jax.block_until_ready((logits_sub, obj_preds))

    ref_sub, ref_obj = reference_head(out, sub_ids, params)
    assert logits_sub.shape == (BATCH, SEQ, 2)
    assert obj_preds.shape == (BATCH, SEQ, NUM_PREDICATES, 2)
    assert jnp.allclose(logits_sub, ref_sub, atol=1e-4, rtol=1e-4)
    assert jnp.allclose(obj_preds, ref_obj, atol=1e-4, rtol=1e-4)

    print("KERNEL_OK")
</pallas_src>

<mosaic_0001>
module attributes {stable_mosaic.version = 11 : i64} {
  func.func @re_head_kernel(%arg0: i32, %arg1: memref<2x2xi32, #tpu.memory_space<smem>>, %arg2: memref<16x128xf32, #tpu.memory_space<vmem>>, %arg3: memref<16x128xf32, #tpu.memory_space<vmem>>, %arg4: memref<3x128x128xf32, #tpu.memory_space<vmem>>, %arg5: memref<8x128xf32, #tpu.memory_space<vmem>>, %arg6: memref<16x128xf32, #tpu.memory_space<vmem>>, %arg7: memref<16x128xf32, #tpu.memory_space<vmem>>) attributes {dimension_semantics = [#tpu.dimension_semantics<arbitrary>], iteration_bounds = array<i64: 1>, scalar_prefetch = 1 : i64, scratch_operands = 0 : i64, tpu.core_type = #tpu.core_type<tc>, window_params = [{pipeline_mode = #tpu.pipeline_mode<synchronous>, transform_indices = @transform_0, window_bounds = array<i64: 16, 128>}, {pipeline_mode = #tpu.pipeline_mode<synchronous>, transform_indices = @transform_1, window_bounds = array<i64: 16, 128>}, {pipeline_mode = #tpu.pipeline_mode<synchronous>, transform_indices = @transform_2, window_bounds = array<i64: 3, 128, 128>}, {pipeline_mode = #tpu.pipeline_mode<synchronous>, transform_indices = @transform_3, window_bounds = array<i64: 8, 128>}, {pipeline_mode = #tpu.pipeline_mode<synchronous>, transform_indices = @transform_4, window_bounds = array<i64: 16, 128>}, {pipeline_mode = #tpu.pipeline_mode<synchronous>, transform_indices = @transform_5, window_bounds = array<i64: 16, 128>}]} {
    %c0 = arith.constant 0 : index
    %c0_0 = arith.constant 0 : index
    %0 = vector.load %arg2[%c0, %c0_0] : memref<16x128xf32, #tpu.memory_space<vmem>>, vector<16x128xf32>
    %c0_1 = arith.constant 0 : index
    %c0_2 = arith.constant 0 : index
    %c0_3 = arith.constant 0 : index
    %1 = vector.load %arg4[%c0_1, %c0_2, %c0_3] : memref<3x128x128xf32, #tpu.memory_space<vmem>>, vector<1x128x128xf32>
    %2 = vector.shape_cast %1 : vector<1x128x128xf32> to vector<128x128xf32>
    %cst = arith.constant dense<0.000000e+00> : vector<16x128xf32>
    %3 = tpu.matmul %0, %2, %cst {dimension_numbers = #tpu.dot_dimension_numbers<[1], [0], [0], [1], [0, 0, 1, 1], [], []>} : vector<16x128xf32>, vector<128x128xf32>, vector<16x128xf32> -> vector<16x128xf32>
    %c0_4 = arith.constant 0 : index
    %c0_5 = arith.constant 0 : index
    %4 = vector.load %arg5[%c0_4, %c0_5] : memref<8x128xf32, #tpu.memory_space<vmem>>, vector<1x128xf32>
    %5 = vector.broadcast %4 : vector<1x128xf32> to vector<16x128xf32>
    %6 = arith.addf %3, %5 : vector<16x128xf32>
    %c0_6 = arith.constant 0 : index
    %c0_7 = arith.constant 0 : index
    %7 = vector.load %arg6[%c0_6, %c0_7] : memref<16x128xf32, #tpu.memory_space<vmem>>, vector<16x128xf32>
    tpu.vector_store %arg6[%c0_6, %c0_7], %6 {strides = array<i32>} : memref<16x128xf32, #tpu.memory_space<vmem>>, vector<16x128xf32>,
    %c0_8 = arith.constant 0 : index
    %c0_9 = arith.constant 0 : index
    %8 = memref.load %arg1[%c0_8, %c0_9] : memref<2x2xi32, #tpu.memory_space<smem>>
    %c0_10 = arith.constant 0 : index
    %c1 = arith.constant 1 : index
    %9 = memref.load %arg1[%c0_10, %c1] : memref<2x2xi32, #tpu.memory_space<smem>>
    %10 = arith.index_cast %8 : i32 to index
    %c0_11 = arith.constant 0 : index
    %11 = vector.load %arg3[%10, %c0_11] : memref<16x128xf32, #tpu.memory_space<vmem>>, vector<1x128xf32>
    %12 = arith.index_cast %9 : i32 to index
    %c0_12 = arith.constant 0 : index
    %13 = vector.load %arg3[%12, %c0_12] : memref<16x128xf32, #tpu.memory_space<vmem>>, vector<1x128xf32>
    %14 = arith.addf %11, %13 : vector<1x128xf32>
    %c0_i32 = arith.constant 0 : i32
    %15 = arith.addi %c0_i32, %8 : i32
    %16 = arith.index_cast %15 : i32 to index
    %c0_13 = arith.constant 0 : index
    %17 = vector.load %arg2[%16, %c0_13] : memref<16x128xf32, #tpu.memory_space<vmem>>, vector<1x128xf32>
    %18 = arith.addf %14, %17 : vector<1x128xf32>
    %c0_i32_14 = arith.constant 0 : i32
    %19 = arith.addi %c0_i32_14, %9 : i32
    %20 = arith.index_cast %19 : i32 to index
    %c0_15 = arith.constant 0 : index
    %21 = vector.load %arg2[%20, %c0_15] : memref<16x128xf32, #tpu.memory_space<vmem>>, vector<1x128xf32>
    %22 = arith.addf %18, %21 : vector<1x128xf32>
    %23 = vector.extract_strided_slice %0 {offsets = [0, 0], sizes = [8, 128], strides = [1, 1]} : vector<16x128xf32> to vector<8x128xf32>
    %24 = vector.broadcast %22 : vector<1x128xf32> to vector<8x128xf32>
    %25 = arith.addf %23, %24 : vector<8x128xf32>
    %c1_16 = arith.constant 1 : index
    %c0_17 = arith.constant 0 : index
    %26 = memref.load %arg1[%c1_16, %c0_17] : memref<2x2xi32, #tpu.memory_space<smem>>
    %c1_18 = arith.constant 1 : index
    %c1_19 = arith.constant 1 : index
    %27 = memref.load %arg1[%c1_18, %c1_19] : memref<2x2xi32, #tpu.memory_space<smem>>
    %28 = arith.index_cast %26 : i32 to index
    %c0_20 = arith.constant 0 : index
    %29 = vector.load %arg3[%28, %c0_20] : memref<16x128xf32, #tpu.memory_space<vmem>>, vector<1x128xf32>
    %30 = arith.index_cast %27 : i32 to index
    %c0_21 = arith.constant 0 : index
    %31 = vector.load %arg3[%30, %c0_21] : memref<16x128xf32, #tpu.memory_space<vmem>>, vector<1x128xf32>
    %32 = arith.addf %29, %31 : vector<1x128xf32>
    %c8_i32 = arith.constant 8 : i32
    %33 = arith.addi %c8_i32, %26 : i32
    %34 = arith.index_cast %33 : i32 to index
    %c0_22 = arith.constant 0 : index
    %35 = vector.load %arg2[%34, %c0_22] : memref<16x128xf32, #tpu.memory_space<vmem>>, vector<1x128xf32>
    %36 = arith.addf %32, %35 : vector<1x128xf32>
    %c8_i32_23 = arith.constant 8 : i32
    %37 = arith.addi %c8_i32_23, %27 : i32
    %38 = arith.index_cast %37 : i32 to index
    %c0_24 = arith.constant 0 : index
    %39 = vector.load %arg2[%38, %c0_24] : memref<16x128xf32, #tpu.memory_space<vmem>>, vector<1x128xf32>
    %40 = arith.addf %36, %39 : vector<1x128xf32>
    %41 = vector.extract_strided_slice %0 {offsets = [8, 0], sizes = [8, 128], strides = [1, 1]} : vector<16x128xf32> to vector<8x128xf32>
    %42 = vector.broadcast %40 : vector<1x128xf32> to vector<8x128xf32>
    %43 = arith.addf %41, %42 : vector<8x128xf32>
    %44 = tpu.concatenate %25, %43 in 0 : vector<8x128xf32>, vector<8x128xf32> -> vector<16x128xf32>
    %cst_25 = arith.constant dense<0.000000e+00> : vector<16xf32>
    %45 = vector.multi_reduction <add>, %44, %cst_25 [1] : vector<16x128xf32> to vector<16xf32>
    %46 = vector.shape_cast %45 : vector<16xf32> to vector<16x1xf32>
    %cst_26 = arith.constant 1.280000e+02 : f32
    %47 = vector.broadcast %cst_26 : f32 to vector<16x1xf32>
    %48 = arith.divf %46, %47 : vector<16x1xf32>
    %49 = vector.broadcast %48 : vector<16x1xf32> to vector<16x128xf32>
    %50 = arith.subf %44, %49 : vector<16x128xf32>
    %51 = arith.mulf %50, %50 : vector<16x128xf32>
    %cst_27 = arith.constant dense<0.000000e+00> : vector<16xf32>
    %52 = vector.multi_reduction <add>, %51, %cst_27 [1] : vector<16x128xf32> to vector<16xf32>
    %53 = vector.shape_cast %52 : vector<16xf32> to vector<16x1xf32>
    %cst_28 = arith.constant 1.280000e+02 : f32
    %54 = vector.broadcast %cst_28 : f32 to vector<16x1xf32>
    %55 = arith.divf %53, %54 : vector<16x1xf32>
    %56 = vector.broadcast %48 : vector<16x1xf32> to vector<16x128xf32>
    %57 = arith.subf %44, %56 : vector<16x128xf32>
    %cst_29 = arith.constant 9.99999996E-13 : f32
    %58 = vector.broadcast %cst_29 : f32 to vector<16x1xf32>
    %59 = arith.addf %55, %58 : vector<16x1xf32>
    %60 = math.rsqrt %59 : vector<16x1xf32>
    %61 = vector.broadcast %60 : vector<16x1xf32> to vector<16x128xf32>
    %62 = arith.mulf %57, %61 : vector<16x128xf32>
    %c1_30 = arith.constant 1 : index
    %c0_31 = arith.constant 0 : index
    %c0_32 = arith.constant 0 : index
    %63 = vector.load %arg4[%c1_30, %c0_31, %c0_32] : memref<3x128x128xf32, #tpu.memory_space<vmem>>, vector<1x128x128xf32>
    %64 = vector.shape_cast %63 : vector<1x128x128xf32> to vector<128x128xf32>
    %cst_33 = arith.constant dense<0.000000e+00> : vector<16x128xf32>
    %65 = tpu.matmul %62, %64, %cst_33 {dimension_numbers = #tpu.dot_dimension_numbers<[1], [0], [0], [1], [0, 0, 1, 1], [], []>} : vector<16x128xf32>, vector<128x128xf32>, vector<16x128xf32> -> vector<16x128xf32>
    %c1_34 = arith.constant 1 : index
    %c0_35 = arith.constant 0 : index
    %66 = vector.load %arg5[%c1_34, %c0_35] : memref<8x128xf32, #tpu.memory_space<vmem>>, vector<1x128xf32>
    %67 = vector.broadcast %66 : vector<1x128xf32> to vector<16x128xf32>
    %68 = arith.addf %65, %67 : vector<16x128xf32>
    %cst_36 = arith.constant 0.000000e+00 : f32
    %69 = vector.broadcast %cst_36 : f32 to vector<16x128xf32>
    %70 = arith.maximumf %68, %69 : vector<16x128xf32>
    %c2 = arith.constant 2 : index
    %c0_37 = arith.constant 0 : index
    %c0_38 = arith.constant 0 : index
    %71 = vector.load %arg4[%c2, %c0_37, %c0_38] : memref<3x128x128xf32, #tpu.memory_space<vmem>>, vector<1x128x128xf32>
    %72 = vector.shape_cast %71 : vector<1x128x128xf32> to vector<128x128xf32>
    %cst_39 = arith.constant dense<0.000000e+00> : vector<16x128xf32>
    %73 = tpu.matmul %70, %72, %cst_39 {dimension_numbers = #tpu.dot_dimension_numbers<[1], [0], [0], [1], [0, 0, 1, 1], [], []>} : vector<16x128xf32>, vector<128x128xf32>, vector<16x128xf32> -> vector<16x128xf32>
    %c2_40 = arith.constant 2 : index
    %c0_41 = arith.constant 0 : index
    %74 = vector.load %arg5[%c2_40, %c0_41] : memref<8x128xf32, #tpu.memory_space<vmem>>, vector<1x128xf32>
    %75 = vector.broadcast %74 : vector<1x128xf32> to vector<16x128xf32>
    %76 = arith.addf %73, %75 : vector<16x128xf32>
    %c0_42 = arith.constant 0 : index
    %c0_43 = arith.constant 0 : index
    %77 = vector.load %arg7[%c0_42, %c0_43] : memref<16x128xf32, #tpu.memory_space<vmem>>, vector<16x128xf32>
    tpu.vector_store %arg7[%c0_42, %c0_43], %76 {strides = array<i32>} : memref<16x128xf32, #tpu.memory_space<vmem>>, vector<16x128xf32>,
    return
  }
  func.func @transform_0(%arg0: i32, %arg1: memref<2x2xi32, #tpu.memory_space<smem>>) -> (i32, i32) {
    %c0_i32 = arith.constant 0 : i32
    %c0_i32_0 = arith.constant 0 : i32
    %c0_i32_1 = arith.constant 0 : i32
    return %c0_i32, %c0_i32_0 : i32, i32
  }
  func.func @transform_1(%arg0: i32, %arg1: memref<2x2xi32, #tpu.memory_space<smem>>) -> (i32, i32) {
    %c0_i32 = arith.constant 0 : i32
    %c0_i32_0 = arith.constant 0 : i32
    %c0_i32_1 = arith.constant 0 : i32
    return %c0_i32, %c0_i32_0 : i32, i32
  }
  func.func @transform_2(%arg0: i32, %arg1: memref<2x2xi32, #tpu.memory_space<smem>>) -> (i32, i32, i32) {
    %c0_i32 = arith.constant 0 : i32
    %c0_i32_0 = arith.constant 0 : i32
    %c0_i32_1 = arith.constant 0 : i32
    %c0_i32_2 = arith.constant 0 : i32
    return %c0_i32, %c0_i32_0, %c0_i32_1 : i32, i32, i32
  }
  func.func @transform_3(%arg0: i32, %arg1: memref<2x2xi32, #tpu.memory_space<smem>>) -> (i32, i32) {
    %c0_i32 = arith.constant 0 : i32
    %c0_i32_0 = arith.constant 0 : i32
    %c0_i32_1 = arith.constant 0 : i32
    return %c0_i32, %c0_i32_0 : i32, i32
  }
  func.func @transform_4(%arg0: i32, %arg1: memref<2x2xi32, #tpu.memory_space<smem>>) -> (i32, i32) {
    %c0_i32 = arith.constant 0 : i32
    %c0_i32_0 = arith.constant 0 : i32
    %c0_i32_1 = arith.constant 0 : i32
    return %c0_i32, %c0_i32_0 : i32, i32
  }
  func.func @transform_5(%arg0: i32, %arg1: memref<2x2xi32, #tpu.memory_space<smem>>) -> (i32, i32) {
    %c0_i32 = arith.constant 0 : i32
    %c0_i32_0 = arith.constant 0 : i32
    %c0_i32_1 = arith.constant 0 : i32
    return %c0_i32, %c0_i32_0 : i32, i32
  }
}

</mosaic_0001>

<bundles_post_ra>
// kernel: re_model_head.1
= control target key start
LH: loop header
LB: loop body
LE: loop exit
PB: predicated region body
PF: predicated region fallthrough
CT: control target
= control target key end

     0   :  { %s965_s0 = inlined_call_operand.vmem [shape: s32[2,2], index: 0, kind: input, shape index: {}]   ;;  %s966_s1 = inlined_call_operand.vmem [shape: f32[16,128], index: 1, kind: input, shape index: {}]   ;;  %s967_s2 = inlined_call_operand.vmem [shape: f32[16,128], index: 2, kind: input, shape index: {}]   ;;  %s968_s3 = inlined_call_operand.vmem [shape: f32[3,128,128], index: 3, kind: input, shape index: {}]   ;;  %s969_s4 = inlined_call_operand.vmem [shape: f32[8,128], index: 4, kind: input, shape index: {}]   ;;  %s970_s5 = inlined_call_operand.vmem [shape: f32[16,128], index: 5, kind: output, shape index: {0}]   ;;  %s971_s6 = inlined_call_operand.vmem [shape: f32[16,128], index: 6, kind: output, shape index: {1}]  }
   0x1   :  { %s12_s23 = sshll.u32 %s965_s0, 4  ;;  %s13_s23 = int_to_ptr.vmem [resolvable:$true] %s12_s23 }
   0x2   :  { %s703_s24 = scalar_lea.vmem %s13_s23, 32  ;;  %p708_p1 = scmp.lt.s32.totalorder %s13_s23, %s13_s23 }
   0x3   :  { %p704_p0 = scmp.ne.s32.totalorder %s13_s23, %s703_s24  ;;  %p709_p2 = scmp.lt.s32.totalorder %s703_s24, %s703_s24 }
   0x5   :  { %p710_p3 = por %p709_p2, %p708_p1 }
   0x7   :  { %p711_p4 = pnand %p710_p3, %p704_p0 }
   0x9   :  { %714 = shalt.err (!%p711_p4)  }
   0xa   :  { %s717_s25 = smov [#allocation3]  }
   0xb   :  { %15 = dma.vmem_to_smem %s13_s23, 32, %s717_s25, [#allocation2] }
   0xc   :  { %715 = dma.done.wait [#allocation2], 32 }
   0xd   :  { %716 = vsyncadd [#allocation2], 4294967264 }
   0xe   :  { %17 = sfence }
   0xf   :  { %v26_v0 = vld [vmem:[%s966_s1] sm:$0xff]  ;;  %s126_s28 = sld [smem:[#allocation3]]  ;;  %s404_s29 = sld [smem:[#allocation3 + $0x1]]  ;;  %v139_v1 = vlaneseq  ;;  %v786_v19 = vld [vmem:[%s966_s1 + $0x8] sm:$0xff]  ;;  %v411_v25 = vld [vmem:[%s968_s3 + $0x90] sm:$0xff] }
  0x10   :  { %s405_s0 = sld [smem:[#allocation3 + $0x80]]  ;;  %s406_s30 = sld [smem:[#allocation3 + $0x81]]  ;;  %529 = vmatprep.mubr.f32.mxu0 %v26_v0  ;;  %v409_v23 = vld [vmem:[%s968_s3 + $0x80] sm:$0xff]  ;;  %v410_v24 = vld [vmem:[%s968_s3 + $0x88] sm:$0xff]  ;;  %v412_v27 = vld [vmem:[%s968_s3 + $0x98] sm:$0xff] }
  0x11   :  { %v140_v2 = vshrl.u32 %v139_v1, 7  ;;  %v634_v26 = vpack.c.bf16 %v410_v24, %v409_v23  ;;  %v638_v28 = vpack.c.bf16 %v412_v27, %v411_v25  ;;  %v413_v29 = vld [vmem:[%s968_s3 + $0xa0] sm:$0xff]  ;;  %v414_v30 = vld [vmem:[%s968_s3 + $0xa8] sm:$0xff]  ;;  %v415_v40 = vld [vmem:[%s968_s3 + $0xb0] sm:$0xff] }
  0x12   :  { %v642_v31 = vpack.c.bf16 %v414_v30, %v413_v29  ;;  %v416_v41 = vld [vmem:[%s968_s3 + $0xb8] sm:$0xff]  ;;  %v417_v43 = vld [vmem:[%s968_s3 + $0xc0] sm:$0xff]  ;;  %v418_v44 = vld [vmem:[%s968_s3 + $0xc8] sm:$0xff] }
  0x13   :  { %v141_v11 = vsub.s32 0, %v140_v2  ;;  %635 = vmatprep.subr.bf16.mxu1 %v634_v26  ;;  %v646_v42 = vpack.c.bf16 %v416_v41, %v415_v40  ;;  %v650_v45 = vpack.c.bf16 %v418_v44, %v417_v43  ;;  %v419_v46 = vld [vmem:[%s968_s3 + $0xd0] sm:$0xff]  ;;  %v420_v47 = vld [vmem:[%s968_s3 + $0xd8] sm:$0xff]  ;;  %v421_v49 = vld [vmem:[%s968_s3 + $0xe0] sm:$0xff] }
  0x14   :  { %637 = vmatpush3.bf16.msra.mxu1 %v634_v26  ;;  %v654_v48 = vpack.c.bf16 %v420_v47, %v419_v46  ;;  %v422_v50 = vld [vmem:[%s968_s3 + $0xe8] sm:$0xff]  ;;  %v423_v51 = vld [vmem:[%s968_s3 + $0xf0] sm:$0xff]  ;;  %v424_v53 = vld [vmem:[%s968_s3 + $0xf8] sm:$0xff] }
  0x15   :  { %s128_s9 = scalar_lea.vmem %s967_s2, %s126_s28  ;;  %s130_s12 = scalar_lea.vmem %s967_s2, %s404_s29  ;;  %639 = vmatprep.subr.bf16.mxu1 %v638_v28  ;;  %v658_v52 = vpack.c.bf16 %v422_v50, %v421_v49  ;;  %v662_v54 = vpack.c.bf16 %v424_v53, %v423_v51  ;;  %v28_v55 = vld [vmem:[%s968_s3] sm:$0xff]  ;;  %v29_v56 = vld [vmem:[%s968_s3 + $0x8] sm:$0xff]  ;;  %v30_v57 = vld [vmem:[%s968_s3 + $0x10] sm:$0xff] }
  0x16   :  { %v129_v3 = vld [vmem:[%s128_s9] sm:$0x1]  ;;  %s133_s15 = scalar_lea.vmem %s966_s1, %s126_s28  ;;  %s136_s18 = scalar_lea.vmem %s966_s1, %s404_s29  ;;  %v602_v58 = vpack.c.bf16 %v29_v56, %v28_v55  ;;  %v31_v59 = vld [vmem:[%s968_s3 + $0x18] sm:$0xff]  ;;  %v33_v62 = vld [vmem:[%s968_s3 + $0x28] sm:$0xff] }
  0x17   :  { %v131_v4 = vld [vmem:[%s130_s12] sm:$0x1]  ;;  %s146_s21 = scalar_lea.vmem %s967_s2, %s405_s0  ;;  %s148_s24 = scalar_lea.vmem %s967_s2, %s406_s30  ;;  %v606_v60 = vpack.c.bf16 %v31_v59, %v30_v57  ;;  %v35_v1 = vld [vmem:[%s968_s3 + $0x38] sm:$0xff]  ;;  %v431_v23 = vld [vmem:[%s968_s3 + $0x128] sm:$0xff] }
  0x18   :  { %v132_v5 = vadd.f32 %v131_v4, %v129_v3  ;;  %v134_v6 = vld [vmem:[%s133_s15] sm:$0x1]  ;;  %s399_s27 = scalar_lea.vmem %s966_s1, %s405_s0  ;;  %s401_s29 = scalar_lea.vmem %s966_s1, %s406_s30  ;;  %641 = vmatpush3.bf16.msra.mxu1 %v638_v28  ;;  %603 = vmatprep.subr.bf16.mxu0 %v602_v58  ;;  %v37_v4 = vld [vmem:[%s968_s3 + $0x48] sm:$0xff]  ;;  %v432_v25 = vld [vmem:[%s968_s3 + $0x130] sm:$0xff] }
  0x19   :  { %v137_v7 = vld [vmem:[%s136_s18] sm:$0x1]  ;;  %v407_v13 = vld [vmem:[%s399_s27 + $0x8] sm:$0x1]  ;;  %643 = vmatprep.subr.bf16.mxu1 %v642_v31  ;;  %605 = vmatpush3.bf16.msra.mxu0 %v602_v58  ;;  %v433_v26 = vld [vmem:[%s968_s3 + $0x138] sm:$0xff] }
  0x1a   :  { %v147_v8 = vld [vmem:[%s146_s21] sm:$0x1]  ;;  %v135_v10 = vadd.f32 %v134_v6, %v132_v5  ;;  %v408_v14 = vld [vmem:[%s401_s29 + $0x8] sm:$0x1]  ;;  %607 = vmatprep.subr.bf16.mxu0 %v606_v60  ;;  %v38_v6 = vld [vmem:[%s968_s3 + $0x50] sm:$0xff]  ;;  %v678_v27 = vpack.c.bf16 %v433_v26, %v432_v25 }
  0x1b   :  { %v149_v9 = vld [vmem:[%s148_s24] sm:$0x1]  ;;  %v436_v30 = vld [vmem:[%s968_s3 + $0x150] sm:$0xff]  ;;  %v441_v49 = vld [vmem:[%s968_s3 + $0x178] sm:$0xff] }
  0x1c   :  { %v150_v12 = vadd.f32 %v149_v9, %v147_v8  ;;  %v138_v15 = vadd.f32 %v137_v7, %v135_v10  ;;  %645 = vmatpush3.bf16.msra.mxu1 %v642_v31  ;;  %v32_v61 = vld [vmem:[%s968_s3 + $0x20] sm:$0xff]  ;;  %v39_v7 = vld [vmem:[%s968_s3 + $0x58] sm:$0xff]  ;;  %v41_v10 = vld [vmem:[%s968_s3 + $0x68] sm:$0xff] }
  0x1d   :  { %647 = vmatprep.subr.bf16.mxu1 %v646_v42  ;;  %v610_v63 = vpack.c.bf16 %v33_v62, %v32_v61  ;;  %609 = vmatpush3.bf16.msra.mxu0 %v606_v60  ;;  %v36_v3 = vld [vmem:[%s968_s3 + $0x40] sm:$0xff]  ;;  %v622_v8 = vpack.c.bf16 %v39_v7, %v38_v6  ;;  %v437_v31 = vld [vmem:[%s968_s3 + $0x158] sm:$0xff] }
  0x1e   :  { %v154_v16 = vadd.f32 %v407_v13, %v150_v12  ;;  %v142_v17 = vrot.slane %v138_v15, %v141_v11  ;;  %v618_v5 = vpack.c.bf16 %v37_v4, %v36_v3  ;;  %v40_v9 = vld [vmem:[%s968_s3 + $0x60] sm:$0xff]  ;;  %v42_v12 = vld [vmem:[%s968_s3 + $0x70] sm:$0xff]  ;;  %v43_v13 = vld [vmem:[%s968_s3 + $0x78] sm:$0xff] }
  0x1f   :  { %611 = vmatprep.subr.bf16.mxu0 %v610_v63  ;;  %v426_v15 = vld [vmem:[%s968_s3 + $0x100] sm:$0xff] }
  0x20   :  { %v158_v18 = vadd.f32 %v408_v14, %v154_v16  ;;  %v143_v20 = vadd.f32 %v142_v17, %v26_v0  ;;  %649 = vmatpush3.bf16.msra.mxu1 %v646_v42  ;;  %v34_v0 = vld [vmem:[%s968_s3 + $0x30] sm:$0xff]  ;;  %v630_v14 = vpack.c.bf16 %v43_v13, %v42_v12  ;;  %v427_v16 = vld [vmem:[%s968_s3 + $0x108] sm:$0xff]  ;;  %v434_v28 = vld [vmem:[%s968_s3 + $0x140] sm:$0xff] }
  0x21   :  { %651 = vmatprep.subr.bf16.mxu1 %v650_v45  ;;  %v614_v2 = vpack.c.bf16 %v35_v1, %v34_v0  ;;  %613 = vmatpush3.bf16.msra.mxu0 %v610_v63  ;;  %v666_v17 = vpack.c.bf16 %v427_v16, %v426_v15  ;;  %v442_v61 = vld [vmem:[%s969_s4 + $0x2] ss:$0 sm:$0xff] }
  0x22   :  { %v162_v21 = vrot.slane %v158_v18, %v141_v11  ;;  %164 = vadd.xlane.f32.xlu0 %v143_v20  ;;  %v626_v11 = vpack.c.bf16 %v41_v10, %v40_v9  ;;  %v428_v18 = vld [vmem:[%s968_s3 + $0x110] sm:$0xff] }
  0x23   :  { %615 = vmatprep.subr.bf16.mxu0 %v614_v2 }
  0x24   :  { %v163_v22 = vadd.f32 %v162_v21, %v786_v19  ;;  %653 = vmatpush3.bf16.msra.mxu1 %v650_v45 }
  0x25   :  { %655 = vmatprep.subr.bf16.mxu1 %v654_v48  ;;  %617 = vmatpush3.bf16.msra.mxu0 %v614_v2 }
  0x26   :  { %166 = vadd.xlane.f32.xlu0 %v163_v22  ;;  %619 = vmatprep.subr.bf16.mxu0 %v618_v5 }
  0x28   :  { %657 = vmatpush3.bf16.msra.mxu1 %v654_v48  ;;  %v440_v48 = vld [vmem:[%s968_s3 + $0x170] sm:$0xff] }
  0x29   :  { %659 = vmatprep.subr.bf16.mxu1 %v658_v52  ;;  %621 = vmatpush3.bf16.msra.mxu0 %v618_v5  ;;  %v694_v50 = vpack.c.bf16 %v441_v49, %v440_v48 }
  0x2a   :  { %623 = vmatprep.subr.bf16.mxu0 %v622_v8 }
  0x2c   :  { %661 = vmatpush3.bf16.msra.mxu1 %v658_v52 }
  0x2d   :  { %663 = vmatprep.subr.bf16.mxu1 %v662_v54  ;;  %625 = vmatpush3.bf16.msra.mxu0 %v622_v8 }
  0x2e   :  { %627 = vmatprep.subr.bf16.mxu0 %v626_v11 }
  0x30   :  { %665 = vmatpush3.bf16.msra.mxu1 %v662_v54  ;;  %v425_v54 = vld [vmem:[%s969_s4 + $0x1] ss:$0 sm:$0xff] }
  0x31   :  { %629 = vmatpush3.bf16.msra.mxu0 %v626_v11 }
  0x32   :  { %631 = vmatprep.subr.bf16.mxu0 %v630_v14 }
  0x35   :  { %633 = vmatpush3.bf16.msra.mxu0 %v630_v14 }
  0x36   :  { %667 = vmatprep.subr.bf16.mxu0 %v666_v17 }
  0x38   :  { %530 = vmatmul.mubr.f32.vlgmr.msra.gmra.mrb[0].mxu0 %v786_v19  ;;  %v435_v19 = vld [vmem:[%s968_s3 + $0x148] sm:$0xff] }
  0x39   :  { %669 = vmatpush3.bf16.msra.mxu0 %v666_v17  ;;  %v682_v29 = vpack.c.bf16 %v435_v19, %v434_v28 }
  0xaf   :  { %v165_v32 = vpop.xlane.xlu0 %164 }
  0xb0   :  { %v169_v33 = vmul.f32 0.0078125, %v165_v32  ;;  %v686_v32 = vpack.c.bf16 %v437_v31, %v436_v30 }
  0xb2   :  { %v807_v34 = vsub.f32 %v143_v20, %v169_v33  ;;  %v429_v20 = vld [vmem:[%s968_s3 + $0x118] sm:$0xff]  ;;  %v438_v33 = vld [vmem:[%s968_s3 + $0x160] sm:$0xff] }
  0xb3   :  { %v167_v35 = vpop.xlane.xlu0 %166  ;;  %v670_v21 = vpack.c.bf16 %v429_v20, %v428_v18 }
  0xb4   :  { %v170_v36 = vmul.f32 0.0078125, %v167_v35  ;;  %v173_v37 = vmul.f32 %v807_v34, %v807_v34  ;;  %v439_v35 = vld [vmem:[%s968_s3 + $0x168] sm:$0xff] }
  0xb5   :  { %671 = vmatprep.subr.bf16.mxu0 %v670_v21 }
  0xb6   :  { %v811_v38 = vsub.f32 %v163_v22, %v170_v36  ;;  %175 = vadd.xlane.f32.xlu1 %v173_v37  ;;  %v430_v22 = vld [vmem:[%s968_s3 + $0x120] sm:$0xff]  ;;  %673 = vmatpush3.bf16.msra.mxu0 %v670_v21  ;;  %v690_v36 = vpack.c.bf16 %v439_v35, %v438_v33 }
  0xb7   :  { %v674_v24 = vpack.c.bf16 %v431_v23, %v430_v22 }
  0xb8   :  { %v174_v39 = vmul.f32 %v811_v38, %v811_v38 }
  0xb9   :  { %675 = vmatprep.subr.bf16.mxu0 %v674_v24 }
  0xba   :  { %177 = vadd.xlane.f32.xlu1 %v174_v39  ;;  %677 = vmatpush3.bf16.msra.mxu0 %v674_v24 }
  0xbb   :  { %679 = vmatprep.subr.bf16.mxu0 %v678_v27 }
  0xbe   :  { %681 = vmatpush3.bf16.msra.mxu0 %v678_v27 }
  0xbf   :  { %683 = vmatprep.subr.bf16.mxu0 %v682_v29 }
  0xc2   :  { %685 = vmatpush3.bf16.msra.mxu0 %v682_v29 }
  0xc3   :  { %687 = vmatprep.subr.bf16.mxu0 %v686_v32 }
  0xc6   :  { %689 = vmatpush3.bf16.msra.mxu0 %v686_v32 }
  0xc7   :  { %691 = vmatprep.subr.bf16.mxu0 %v690_v36 }
  0xca   :  { %693 = vmatpush3.bf16.msra.mxu0 %v690_v36 }
  0xcb   :  { %695 = vmatprep.subr.bf16.mxu0 %v694_v50 }
  0xce   :  { %697 = vmatpush3.bf16.msra.mxu0 %v694_v50 }
 0x10b   :  { %v531_v51 = vpop.f32.mrb[0].mxu0 }
 0x10c   :  { %v115_v53 = vpop.f32.mrb[1].mxu0 }
 0x143   :  { %v176_v37 = vpop.xlane.xlu1 %175 }
 0x144   :  { %v179_v39 = vmul.f32 0.0078125, %v176_v37 }
 0x146   :  { %v181_v40 = vadd.f32 1e-12, %v179_v39 }
 0x147   :  { %v178_v41 = vpop.xlane.xlu1 %177 }
 0x148   :  { %699 = vrsqrt.f32 %v181_v40  ;;  %v180_v42 = vmul.f32 0.0078125, %v178_v41 }
 0x14a   :  { %v182_v43 = vadd.f32 1e-12, %v180_v42 }
 0x14c   :  { %701 = vrsqrt.f32 %v182_v43 }
 0x152   :  { %v700_v44 = vpop.eup %699 }
 0x153   :  { %v185_v45 = vmul.f32 %v700_v44, %v807_v34  ;;  %v403_v34 = vld [vmem:[%s969_s4] ss:$0 sm:$0xff] }
 0x154   :  { %v121_v52 = vadd.f32 %v531_v51, %v403_v34 }
 0x155   :  { %564 = vmatprep.mubr.f32.mxu1 %v185_v45 }
 0x156   :  { %v702_v46 = vpop.eup %701  ;;  %125 = vst [vmem:[%s970_s5 + $0x8] sm:$0xff] %v121_v52 }
 0x157   :  { %v186_v47 = vmul.f32 %v702_v46, %v811_v38  ;;  %v116_v38 = vadd.f32 %v403_v34, %v115_v53 }
 0x159   :  { %565 = vmatmul.mubr.f32.vlgmr.msra.gmra.mrb[0].mxu1 %v186_v47  ;;  %124 = vst [vmem:[%s970_s5] sm:$0xff] %v116_v38 }
 0x22c   :  { %v566_v55 = vpop.f32.mrb[0].mxu1 }
 0x22d   :  { %v281_v56 = vadd.f32 %v566_v55, %v425_v54  ;;  %v275_v57 = vpop.f32.mrb[1].mxu1 }
 0x22e   :  { %v276_v58 = vadd.f32 %v425_v54, %v275_v57 }
 0x22f   :  { %v285_v60 = vmax.f32 %v281_v56, 0.0 }
 0x230   :  { %v284_v59 = vmax.f32 %v276_v58, 0.0 }
 0x232   :  { %599 = vmatprep.mubr.f32.mxu0 %v284_v59 }
 0x233   :  { %600 = vmatmul.mubr.f32.vlgmr.msra.gmra.mrb[2].mxu0 %v285_v60 }
 0x306   :  { %v601_v62 = vpop.f32.mrb[2].mxu0 }
 0x307   :  { %v380_v63 = vadd.f32 %v601_v62, %v442_v61  ;;  %v374_v0 = vpop.f32.mrb[3].mxu0 }
 0x308   :  { %v375_v1 = vadd.f32 %v442_v61, %v374_v0 }
 0x309   :  { %384 = vst [vmem:[%s971_s6 + $0x8] sm:$0xff] %v380_v63 }
 0x30a   :  { %383 = vst [vmem:[%s971_s6] sm:$0xff] %v375_v1 }

</bundles_post_ra>
